<compile_context>
chip_gen: v7x
topology: tpu7x:2x2x1
jax: 0.10.0
libtpu: 0.0.40
codegen_flags: <defaults>
</compile_context>

<pallas_src>
import functools

import jax
import jax.numpy as jnp
from jax.experimental import pallas as pl
from jax.experimental.pallas import tpu as pltpu

EPS = 1e-5
NEG_SLOPE = 0.01


def _conv_bn_lrelu(x2, s_ref, bw_ref, gamma_l, beta_l, grp, inv_cnt):
    """One Conv3x3 + BN(train) + LeakyReLU stage, fully in (rows, W*C) layout.

    x2      : (N*H, W*Cin)       activation slab (lane index = w*Cin + ci)
    s_ref   : (2, N*H, N*H)      row-shift matrices (0: pick row h-1, 1: pick row h+1)
    bw_ref  : (3, W*Cin, W*Cout) banded conv weights, one per kernel row kh
    gamma_l : (1, W*Cout)        BN gamma, lane-tiled
    beta_l  : (1, W*Cout)        BN beta, lane-tiled
    grp     : (W*Cout, W*Cout)   channel-group sum + broadcast matrix
    """
    f32 = jnp.float32
    # H-direction taps via tiny matmuls (zero at image boundaries, batch-aware).
    x_up = jnp.dot(s_ref[0], x2, preferred_element_type=f32)   # row h -> x[h-1]
    x_dn = jnp.dot(s_ref[1], x2, preferred_element_type=f32)   # row h -> x[h+1]

    # 3x3 conv == 3 banded matmuls (kw taps + W 'same' padding live inside bw_ref[kh]).
    y = jnp.dot(x_up, bw_ref[0], preferred_element_type=f32)
    y = y + jnp.dot(x2, bw_ref[1], preferred_element_type=f32)
    y = y + jnp.dot(x_dn, bw_ref[2], preferred_element_type=f32)   # (N*H, W*Cout)

    # BatchNorm (training mode, biased variance) -- single pass over y.
    s1 = jnp.sum(y, axis=0, keepdims=True)        # per-(w, c) sums      (1, W*Cout)
    s2 = jnp.sum(y * y, axis=0, keepdims=True)    # per-(w, c) sum-sq    (1, W*Cout)
    mu = jnp.dot(s1, grp, preferred_element_type=f32) * inv_cnt   # per-channel mean, lane-tiled
    ex2 = jnp.dot(s2, grp, preferred_element_type=f32) * inv_cnt
    var = ex2 - mu * mu
    scale = gamma_l * jax.lax.rsqrt(var + EPS)
    shift = beta_l - mu * scale
    z = y * scale + shift
    return jnp.where(z > 0, z, NEG_SLOPE * z)


def _double_conv_kernel(x_ref, s_ref, bw1_ref, bw2_ref, g1_ref, b1_ref,
                        g2_ref, b2_ref, grp_ref, out_ref, *, inv_cnt):
    grp = grp_ref[...]
    h1 = _conv_bn_lrelu(x_ref[...], s_ref, bw1_ref, g1_ref[...], b1_ref[...], grp, inv_cnt)
    h2 = _conv_bn_lrelu(h1, s_ref, bw2_ref, g2_ref[...], b2_ref[...], grp, inv_cnt)
    out_ref[...] = h2.astype(out_ref.dtype)


def _band_matrices(w_oihw, Wd):
    """OIHW 3x3 conv weights -> (3, Wd*Cin, Wd*Cout) banded matmul weights.

    bw[kh, wi*Cin + ci, wo*Cout + co] = w[co, ci, kh, wi - wo + 1] when |wi - wo| <= 1
    else 0, i.e. the kw taps and the zero 'same' padding along W are folded into the
    band structure of one matmul per kernel row.
    """
    Cout, Cin, KH, KW = w_oihw.shape
    w_hwio = jnp.transpose(w_oihw, (2, 3, 1, 0)).astype(jnp.float32)     # (KH, KW, Cin, Cout)
    wi = jnp.arange(Wd)[:, None, None]
    wo = jnp.arange(Wd)[None, :, None]
    kw = jnp.arange(KW)[None, None, :]
    sel = (wi - wo + 1 == kw).astype(jnp.float32)                        # (Wd, Wd, KW), 0/1
    bw = jnp.einsum('abk,hkio->haibo', sel, w_hwio)                      # (KH, Wd, Cin, Wd, Cout)
    return bw.reshape(KH, Wd * Cin, Wd * Cout)


def _shift_matrices(N, H):
    """(2, N*H, N*H) 0/1 matrices: S[0] @ X picks row h-1, S[1] @ X picks row h+1,
    zero across image boundaries ('same' padding along H, batch-boundary aware)."""
    NH = N * H
    r = jnp.arange(NH)[:, None]
    c = jnp.arange(NH)[None, :]
    up = ((c == r - 1) & (r % H != 0)).astype(jnp.float32)
    dn = ((c == r + 1) & (r % H != H - 1)).astype(jnp.float32)
    return jnp.stack([up, dn])


def double_conv(x_nchw, w1_oihw, w2_oihw, gamma1, beta1, gamma2, beta2):
    """DoubleConv forward. x_nchw: (N, Cin, H, W) float32 -> (N, Cout, H, W)."""
    N, Cin, H, W = x_nchw.shape
    Cout = w1_oihw.shape[0]
    Lin, Lout = W * Cin, W * Cout
    NH = N * H

    # Boundary glue only (in an NHWC end-to-end model the transpose would be hoisted
    # out and the weight banding done once at parameter-load time).
    x2 = jnp.transpose(x_nchw, (0, 2, 3, 1)).astype(jnp.float32).reshape(NH, Lin)
    S = _shift_matrices(N, H)                         # (2, NH, NH)
    bw1 = _band_matrices(w1_oihw, W)                  # (3, W*Cin,  W*Cout)
    bw2 = _band_matrices(w2_oihw, W)                  # (3, W*Cout, W*Cout)
    g1 = jnp.tile(gamma1.astype(jnp.float32).reshape(1, Cout), (1, W))
    b1 = jnp.tile(beta1.astype(jnp.float32).reshape(1, Cout), (1, W))
    g2 = jnp.tile(gamma2.astype(jnp.float32).reshape(1, Cout), (1, W))
    b2 = jnp.tile(beta2.astype(jnp.float32).reshape(1, Cout), (1, W))
    grp = jnp.tile(jnp.eye(Cout, dtype=jnp.float32), (W, W))   # (Lout, Lout): c==c' blocks

    vmem = pl.BlockSpec(memory_space=pltpu.MemorySpace.VMEM)
    n_elems = (x2.size + S.size + bw1.size + bw2.size + 4 * Lout + grp.size + NH * Lout)
    vmem_bytes = int(max(4 * 1024 * 1024, 8 * 4 * n_elems))    # actual buffers + headroom

    kernel = functools.partial(_double_conv_kernel, inv_cnt=1.0 / float(N * H * W))
    out2 = pl.pallas_call(
        kernel,
        out_shape=jax.ShapeDtypeStruct((NH, Lout), jnp.float32),
        in_specs=[vmem] * 9,
        out_specs=vmem,
        compiler_params=pltpu.CompilerParams(vmem_limit_bytes=vmem_bytes),
    )(x2, S, bw1, bw2, g1, b1, g2, b2, grp)

    return jnp.transpose(out2.reshape(N, H, W, Cout), (0, 3, 1, 2))   # back to NCHW


def _reference(x_nchw, w1_oihw, w2_oihw, gamma1, beta1, gamma2, beta2):
    """Pure-JAX reference (training-mode BN, LeakyReLU 0.01) for verification."""
    def conv(x, w_oihw):
        w = jnp.transpose(w_oihw, (2, 3, 1, 0))
        return jax.lax.conv_general_dilated(
            x, w, window_strides=(1, 1), padding='SAME',
            dimension_numbers=('NHWC', 'HWIO', 'NHWC'),
            precision=jax.lax.Precision.HIGHEST)

    def bn_leaky(y, g, b):
        mu = jnp.mean(y, axis=(0, 1, 2), keepdims=True)
        var = jnp.mean((y - mu) ** 2, axis=(0, 1, 2), keepdims=True)
        z = (y - mu) / jnp.sqrt(var + EPS) * g + b
        return jnp.where(z > 0, z, NEG_SLOPE * z)

    x = jnp.transpose(x_nchw, (0, 2, 3, 1))
    h = bn_leaky(conv(x, w1_oihw), gamma1, beta1)
    o = bn_leaky(conv(h, w2_oihw), gamma2, beta2)
    return jnp.transpose(o, (0, 3, 1, 2))


if __name__ == "__main__":
    # Small shapes consistent with the module: batch=2, in_channels=4,
    # out_channels=8, spatial=16x16  (W * Cout = 128 -> lane-dense).
    N, Cin, Cout, H, W = 2, 4, 8, 16, 16

    key = jax.random.PRNGKey(0)
    kx, kw1, kw2, kg1, kb1, kg2, kb2 = jax.random.split(key, 7)

    x = jax.random.normal(kx, (N, Cin, H, W), jnp.float32)
    w1 = 0.1 * jax.random.normal(kw1, (Cout, Cin, 3, 3), jnp.float32)   # OIHW
    w2 = 0.1 * jax.random.normal(kw2, (Cout, Cout, 3, 3), jnp.float32)  # OIHW
    gamma1 = 1.0 + 0.1 * jax.random.normal(kg1, (Cout,), jnp.float32)
    beta1 = 0.1 * jax.random.normal(kb1, (Cout,), jnp.float32)
    gamma2 = 1.0 + 0.1 * jax.random.normal(kg2, (Cout,), jnp.float32)
    beta2 = 0.1 * jax.random.normal(kb2, (Cout,), jnp.float32)

    out = jax.block_until_ready(double_conv(x, w1, w2, gamma1, beta1, gamma2, beta2))
    ref = jax.block_until_ready(_reference(x, w1, w2, gamma1, beta1, gamma2, beta2))

    assert out.shape == (N, Cout, H, W)
    err = float(jnp.max(jnp.abs(out - ref)))
    assert jnp.allclose(out, ref, atol=2e-4, rtol=2e-4), err

    print("KERNEL_OK")
</pallas_src>

<mosaic_0001>
module attributes {stable_mosaic.version = 11 : i64} {
  func.func @_double_conv_kernel(%arg0: memref<32x64xf32, #tpu.memory_space<vmem>>, %arg1: memref<2x32x32xf32, #tpu.memory_space<vmem>>, %arg2: memref<3x64x128xf32, #tpu.memory_space<vmem>>, %arg3: memref<3x128x128xf32, #tpu.memory_space<vmem>>, %arg4: memref<1x128xf32, #tpu.memory_space<vmem>>, %arg5: memref<1x128xf32, #tpu.memory_space<vmem>>, %arg6: memref<1x128xf32, #tpu.memory_space<vmem>>, %arg7: memref<1x128xf32, #tpu.memory_space<vmem>>, %arg8: memref<128x128xf32, #tpu.memory_space<vmem>>, %arg9: memref<32x128xf32, #tpu.memory_space<vmem>>) attributes {dimension_semantics = [], scalar_prefetch = 0 : i64, scratch_operands = 0 : i64, tpu.core_type = #tpu.core_type<tc>} {
    %c0 = arith.constant 0 : index
    %c0_0 = arith.constant 0 : index
    %0 = vector.load %arg8[%c0, %c0_0] : memref<128x128xf32, #tpu.memory_space<vmem>>, vector<128x128xf32>
    %c0_1 = arith.constant 0 : index
    %c0_2 = arith.constant 0 : index
    %1 = vector.load %arg0[%c0_1, %c0_2] : memref<32x64xf32, #tpu.memory_space<vmem>>, vector<32x64xf32>
    %c0_3 = arith.constant 0 : index
    %c0_4 = arith.constant 0 : index
    %2 = vector.load %arg4[%c0_3, %c0_4] : memref<1x128xf32, #tpu.memory_space<vmem>>, vector<1x128xf32>
    %c0_5 = arith.constant 0 : index
    %c0_6 = arith.constant 0 : index
    %3 = vector.load %arg5[%c0_5, %c0_6] : memref<1x128xf32, #tpu.memory_space<vmem>>, vector<1x128xf32>
    %c0_7 = arith.constant 0 : index
    %c0_8 = arith.constant 0 : index
    %c0_9 = arith.constant 0 : index
    %4 = vector.load %arg1[%c0_7, %c0_8, %c0_9] : memref<2x32x32xf32, #tpu.memory_space<vmem>>, vector<1x32x32xf32>
    %5 = vector.shape_cast %4 : vector<1x32x32xf32> to vector<32x32xf32>
    %cst = arith.constant dense<0.000000e+00> : vector<32x64xf32>
    %6 = tpu.matmul %5, %1, %cst {dimension_numbers = #tpu.dot_dimension_numbers<[1], [0], [0], [1], [0, 0, 1, 1], [], []>} : vector<32x32xf32>, vector<32x64xf32>, vector<32x64xf32> -> vector<32x64xf32>
    %c1 = arith.constant 1 : index
    %c0_10 = arith.constant 0 : index
    %c0_11 = arith.constant 0 : index
    %7 = vector.load %arg1[%c1, %c0_10, %c0_11] : memref<2x32x32xf32, #tpu.memory_space<vmem>>, vector<1x32x32xf32>
    %8 = vector.shape_cast %7 : vector<1x32x32xf32> to vector<32x32xf32>
    %cst_12 = arith.constant dense<0.000000e+00> : vector<32x64xf32>
    %9 = tpu.matmul %8, %1, %cst_12 {dimension_numbers = #tpu.dot_dimension_numbers<[1], [0], [0], [1], [0, 0, 1, 1], [], []>} : vector<32x32xf32>, vector<32x64xf32>, vector<32x64xf32> -> vector<32x64xf32>
    %c0_13 = arith.constant 0 : index
    %c0_14 = arith.constant 0 : index
    %c0_15 = arith.constant 0 : index
    %10 = vector.load %arg2[%c0_13, %c0_14, %c0_15] : memref<3x64x128xf32, #tpu.memory_space<vmem>>, vector<1x64x128xf32>
    %11 = vector.shape_cast %10 : vector<1x64x128xf32> to vector<64x128xf32>
    %cst_16 = arith.constant dense<0.000000e+00> : vector<32x128xf32>
    %12 = tpu.matmul %6, %11, %cst_16 {dimension_numbers = #tpu.dot_dimension_numbers<[1], [0], [0], [1], [0, 0, 1, 1], [], []>} : vector<32x64xf32>, vector<64x128xf32>, vector<32x128xf32> -> vector<32x128xf32>
    %c1_17 = arith.constant 1 : index
    %c0_18 = arith.constant 0 : index
    %c0_19 = arith.constant 0 : index
    %13 = vector.load %arg2[%c1_17, %c0_18, %c0_19] : memref<3x64x128xf32, #tpu.memory_space<vmem>>, vector<1x64x128xf32>
    %14 = vector.shape_cast %13 : vector<1x64x128xf32> to vector<64x128xf32>
    %cst_20 = arith.constant dense<0.000000e+00> : vector<32x128xf32>
    %15 = tpu.matmul %1, %14, %cst_20 {dimension_numbers = #tpu.dot_dimension_numbers<[1], [0], [0], [1], [0, 0, 1, 1], [], []>} : vector<32x64xf32>, vector<64x128xf32>, vector<32x128xf32> -> vector<32x128xf32>
    %16 = arith.addf %12, %15 : vector<32x128xf32>
    %c2 = arith.constant 2 : index
    %c0_21 = arith.constant 0 : index
    %c0_22 = arith.constant 0 : index
    %17 = vector.load %arg2[%c2, %c0_21, %c0_22] : memref<3x64x128xf32, #tpu.memory_space<vmem>>, vector<1x64x128xf32>
    %18 = vector.shape_cast %17 : vector<1x64x128xf32> to vector<64x128xf32>
    %cst_23 = arith.constant dense<0.000000e+00> : vector<32x128xf32>
    %19 = tpu.matmul %9, %18, %cst_23 {dimension_numbers = #tpu.dot_dimension_numbers<[1], [0], [0], [1], [0, 0, 1, 1], [], []>} : vector<32x64xf32>, vector<64x128xf32>, vector<32x128xf32> -> vector<32x128xf32>
    %20 = arith.addf %16, %19 : vector<32x128xf32>
    %cst_24 = arith.constant dense<0.000000e+00> : vector<128xf32>
    %21 = vector.multi_reduction <add>, %20, %cst_24 [0] : vector<32x128xf32> to vector<128xf32>
    %22 = vector.shape_cast %21 : vector<128xf32> to vector<1x128xf32>
    %23 = arith.mulf %20, %20 : vector<32x128xf32>
    %cst_25 = arith.constant dense<0.000000e+00> : vector<128xf32>
    %24 = vector.multi_reduction <add>, %23, %cst_25 [0] : vector<32x128xf32> to vector<128xf32>
    %25 = vector.shape_cast %24 : vector<128xf32> to vector<1x128xf32>
    %cst_26 = arith.constant dense<0.000000e+00> : vector<1x128xf32>
    %26 = tpu.matmul %22, %0, %cst_26 {dimension_numbers = #tpu.dot_dimension_numbers<[1], [0], [0], [1], [0, 0, 1, 1], [], []>} : vector<1x128xf32>, vector<128x128xf32>, vector<1x128xf32> -> vector<1x128xf32>
    %cst_27 = arith.constant 0.001953125 : f32
    %27 = vector.broadcast %cst_27 : f32 to vector<1x128xf32>
    %28 = arith.mulf %26, %27 : vector<1x128xf32>
    %cst_28 = arith.constant dense<0.000000e+00> : vector<1x128xf32>
    %29 = tpu.matmul %25, %0, %cst_28 {dimension_numbers = #tpu.dot_dimension_numbers<[1], [0], [0], [1], [0, 0, 1, 1], [], []>} : vector<1x128xf32>, vector<128x128xf32>, vector<1x128xf32> -> vector<1x128xf32>
    %cst_29 = arith.constant 0.001953125 : f32
    %30 = vector.broadcast %cst_29 : f32 to vector<1x128xf32>
    %31 = arith.mulf %29, %30 : vector<1x128xf32>
    %32 = arith.mulf %28, %28 : vector<1x128xf32>
    %33 = arith.subf %31, %32 : vector<1x128xf32>
    %cst_30 = arith.constant 9.99999974E-6 : f32
    %34 = vector.broadcast %cst_30 : f32 to vector<1x128xf32>
    %35 = arith.addf %33, %34 : vector<1x128xf32>
    %36 = math.rsqrt %35 : vector<1x128xf32>
    %37 = arith.mulf %2, %36 : vector<1x128xf32>
    %38 = arith.mulf %28, %37 : vector<1x128xf32>
    %39 = arith.subf %3, %38 : vector<1x128xf32>
    %40 = vector.broadcast %37 : vector<1x128xf32> to vector<32x128xf32>
    %41 = arith.mulf %20, %40 : vector<32x128xf32>
    %42 = vector.broadcast %39 : vector<1x128xf32> to vector<32x128xf32>
    %43 = arith.addf %41, %42 : vector<32x128xf32>
    %cst_31 = arith.constant 0.000000e+00 : f32
    %44 = vector.broadcast %cst_31 : f32 to vector<32x128xf32>
    %45 = arith.cmpf ogt, %43, %44 : vector<32x128xf32>
    %cst_32 = arith.constant 0.00999999977 : f32
    %46 = vector.broadcast %cst_32 : f32 to vector<32x128xf32>
    %47 = arith.mulf %46, %43 : vector<32x128xf32>
    %48 = arith.select %45, %43, %47 : vector<32x128xi1>, vector<32x128xf32>
    %c0_33 = arith.constant 0 : index
    %c0_34 = arith.constant 0 : index
    %49 = vector.load %arg6[%c0_33, %c0_34] : memref<1x128xf32, #tpu.memory_space<vmem>>, vector<1x128xf32>
    %c0_35 = arith.constant 0 : index
    %c0_36 = arith.constant 0 : index
    %50 = vector.load %arg7[%c0_35, %c0_36] : memref<1x128xf32, #tpu.memory_space<vmem>>, vector<1x128xf32>
    %c0_37 = arith.constant 0 : index
    %c0_38 = arith.constant 0 : index
    %c0_39 = arith.constant 0 : index
    %51 = vector.load %arg1[%c0_37, %c0_38, %c0_39] : memref<2x32x32xf32, #tpu.memory_space<vmem>>, vector<1x32x32xf32>
    %52 = vector.shape_cast %51 : vector<1x32x32xf32> to vector<32x32xf32>
    %cst_40 = arith.constant dense<0.000000e+00> : vector<32x128xf32>
    %53 = tpu.matmul %52, %48, %cst_40 {dimension_numbers = #tpu.dot_dimension_numbers<[1], [0], [0], [1], [0, 0, 1, 1], [], []>} : vector<32x32xf32>, vector<32x128xf32>, vector<32x128xf32> -> vector<32x128xf32>
    %c1_41 = arith.constant 1 : index
    %c0_42 = arith.constant 0 : index
    %c0_43 = arith.constant 0 : index
    %54 = vector.load %arg1[%c1_41, %c0_42, %c0_43] : memref<2x32x32xf32, #tpu.memory_space<vmem>>, vector<1x32x32xf32>
    %55 = vector.shape_cast %54 : vector<1x32x32xf32> to vector<32x32xf32>
    %cst_44 = arith.constant dense<0.000000e+00> : vector<32x128xf32>
    %56 = tpu.matmul %55, %48, %cst_44 {dimension_numbers = #tpu.dot_dimension_numbers<[1], [0], [0], [1], [0, 0, 1, 1], [], []>} : vector<32x32xf32>, vector<32x128xf32>, vector<32x128xf32> -> vector<32x128xf32>
    %c0_45 = arith.constant 0 : index
    %c0_46 = arith.constant 0 : index
    %c0_47 = arith.constant 0 : index
    %57 = vector.load %arg3[%c0_45, %c0_46, %c0_47] : memref<3x128x128xf32, #tpu.memory_space<vmem>>, vector<1x128x128xf32>
    %58 = vector.shape_cast %57 : vector<1x128x128xf32> to vector<128x128xf32>
    %cst_48 = arith.constant dense<0.000000e+00> : vector<32x128xf32>
    %59 = tpu.matmul %53, %58, %cst_48 {dimension_numbers = #tpu.dot_dimension_numbers<[1], [0], [0], [1], [0, 0, 1, 1], [], []>} : vector<32x128xf32>, vector<128x128xf32>, vector<32x128xf32> -> vector<32x128xf32>
    %c1_49 = arith.constant 1 : index
    %c0_50 = arith.constant 0 : index
    %c0_51 = arith.constant 0 : index
    %60 = vector.load %arg3[%c1_49, %c0_50, %c0_51] : memref<3x128x128xf32, #tpu.memory_space<vmem>>, vector<1x128x128xf32>
    %61 = vector.shape_cast %60 : vector<1x128x128xf32> to vector<128x128xf32>
    %cst_52 = arith.constant dense<0.000000e+00> : vector<32x128xf32>
    %62 = tpu.matmul %48, %61, %cst_52 {dimension_numbers = #tpu.dot_dimension_numbers<[1], [0], [0], [1], [0, 0, 1, 1], [], []>} : vector<32x128xf32>, vector<128x128xf32>, vector<32x128xf32> -> vector<32x128xf32>
    %63 = arith.addf %59, %62 : vector<32x128xf32>
    %c2_53 = arith.constant 2 : index
    %c0_54 = arith.constant 0 : index
    %c0_55 = arith.constant 0 : index
    %64 = vector.load %arg3[%c2_53, %c0_54, %c0_55] : memref<3x128x128xf32, #tpu.memory_space<vmem>>, vector<1x128x128xf32>
    %65 = vector.shape_cast %64 : vector<1x128x128xf32> to vector<128x128xf32>
    %cst_56 = arith.constant dense<0.000000e+00> : vector<32x128xf32>
    %66 = tpu.matmul %56, %65, %cst_56 {dimension_numbers = #tpu.dot_dimension_numbers<[1], [0], [0], [1], [0, 0, 1, 1], [], []>} : vector<32x128xf32>, vector<128x128xf32>, vector<32x128xf32> -> vector<32x128xf32>
    %67 = arith.addf %63, %66 : vector<32x128xf32>
    %cst_57 = arith.constant dense<0.000000e+00> : vector<128xf32>
    %68 = vector.multi_reduction <add>, %67, %cst_57 [0] : vector<32x128xf32> to vector<128xf32>
    %69 = vector.shape_cast %68 : vector<128xf32> to vector<1x128xf32>
    %70 = arith.mulf %67, %67 : vector<32x128xf32>
    %cst_58 = arith.constant dense<0.000000e+00> : vector<128xf32>
    %71 = vector.multi_reduction <add>, %70, %cst_58 [0] : vector<32x128xf32> to vector<128xf32>
    %72 = vector.shape_cast %71 : vector<128xf32> to vector<1x128xf32>
    %cst_59 = arith.constant dense<0.000000e+00> : vector<1x128xf32>
    %73 = tpu.matmul %69, %0, %cst_59 {dimension_numbers = #tpu.dot_dimension_numbers<[1], [0], [0], [1], [0, 0, 1, 1], [], []>} : vector<1x128xf32>, vector<128x128xf32>, vector<1x128xf32> -> vector<1x128xf32>
    %cst_60 = arith.constant 0.001953125 : f32
    %74 = vector.broadcast %cst_60 : f32 to vector<1x128xf32>
    %75 = arith.mulf %73, %74 : vector<1x128xf32>
    %cst_61 = arith.constant dense<0.000000e+00> : vector<1x128xf32>
    %76 = tpu.matmul %72, %0, %cst_61 {dimension_numbers = #tpu.dot_dimension_numbers<[1], [0], [0], [1], [0, 0, 1, 1], [], []>} : vector<1x128xf32>, vector<128x128xf32>, vector<1x128xf32> -> vector<1x128xf32>
    %cst_62 = arith.constant 0.001953125 : f32
    %77 = vector.broadcast %cst_62 : f32 to vector<1x128xf32>
    %78 = arith.mulf %76, %77 : vector<1x128xf32>
    %79 = arith.mulf %75, %75 : vector<1x128xf32>
    %80 = arith.subf %78, %79 : vector<1x128xf32>
    %cst_63 = arith.constant 9.99999974E-6 : f32
    %81 = vector.broadcast %cst_63 : f32 to vector<1x128xf32>
    %82 = arith.addf %80, %81 : vector<1x128xf32>
    %83 = math.rsqrt %82 : vector<1x128xf32>
    %84 = arith.mulf %49, %83 : vector<1x128xf32>
    %85 = arith.mulf %75, %84 : vector<1x128xf32>
    %86 = arith.subf %50, %85 : vector<1x128xf32>
    %87 = vector.broadcast %84 : vector<1x128xf32> to vector<32x128xf32>
    %88 = arith.mulf %67, %87 : vector<32x128xf32>
    %89 = vector.broadcast %86 : vector<1x128xf32> to vector<32x128xf32>
    %90 = arith.addf %88, %89 : vector<32x128xf32>
    %cst_64 = arith.constant 0.000000e+00 : f32
    %91 = vector.broadcast %cst_64 : f32 to vector<32x128xf32>
    %92 = arith.cmpf ogt, %90, %91 : vector<32x128xf32>
    %cst_65 = arith.constant 0.00999999977 : f32
    %93 = vector.broadcast %cst_65 : f32 to vector<32x128xf32>
    %94 = arith.mulf %93, %90 : vector<32x128xf32>
    %95 = arith.select %92, %90, %94 : vector<32x128xi1>, vector<32x128xf32>
    %c0_66 = arith.constant 0 : index
    %c0_67 = arith.constant 0 : index
    %96 = vector.load %arg9[%c0_66, %c0_67] : memref<32x128xf32, #tpu.memory_space<vmem>>, vector<32x128xf32>
    tpu.vector_store %arg9[%c0_66, %c0_67], %95 {strides = array<i32>} : memref<32x128xf32, #tpu.memory_space<vmem>>, vector<32x128xf32>,
    return
  }
}

</mosaic_0001>

<bundles_post_ra>
// kernel: tpu_custom_call.1
= control target key start
LH: loop header
LB: loop body
LE: loop exit
PB: predicated region body
PF: predicated region fallthrough
CT: control target
= control target key end

     0   :  { %14 = vsyncpa [#allocation3], 0  ;;  %s2981_s0 = inlined_call_operand.hbm [shape: f32[32,64], index: 0, kind: input, shape index: {}]   ;;  %s2982_s1 = inlined_call_operand.hbm [shape: f32[2,32,32], index: 1, kind: input, shape index: {}]   ;;  %s2983_s2 = inlined_call_operand.hbm [shape: f32[3,64,128], index: 2, kind: input, shape index: {}]   ;;  %s2984_s3 = inlined_call_operand.hbm [shape: f32[3,128,128], index: 3, kind: input, shape index: {}]   ;;  %s2985_s4 = inlined_call_operand.vmem [shape: f32[1,128], index: 4, kind: input, shape index: {}]   ;;  %s2986_s5 = inlined_call_operand.vmem [shape: f32[1,128], index: 5, kind: input, shape index: {}]   ;;  %s2987_s6 = inlined_call_operand.vmem [shape: f32[1,128], index: 6, kind: input, shape index: {}]   ;;  %s2988_s7 = inlined_call_operand.vmem [shape: f32[1,128], index: 7, kind: input, shape index: {}]   ;;  %s2989_s8 = inlined_call_operand.hbm [shape: f32[128,128], index: 8, kind: input, shape index: {}]   ;;  %s2990_s9 = inlined_call_operand.hbm [shape: f32[32,128], index: 9, kind: output, shape index: {}]  }
   0x1   :  { %15 = vsyncpa [#allocation6], 0 }
   0x2   :  { %16 = vsyncpa [#allocation9], 0 }
   0x3   :  { %17 = vsyncpa [#allocation4], 0  ;;  %s2602_s30 = smov [#allocation5]   ;;  %s2603_s11 = smov [#allocation8]  }
   0x4   :  { %s35_s10 = sshll.u32 %s2602_s30, 4  ;;  %s59_s12 = sshll.u32 %s2603_s11, 4  ;;  %s36_s10 = int_to_ptr.vmem [resolvable:$true] %s35_s10  ;;  %s2663_s12 = int_to_ptr.vmem [resolvable:$true] %s59_s12 }
   0x5   :  { %s2462_s15 = scalar_lea.hbm %s2982_s1, 1024 }
   0x6   :  { %p2463_p0 = scmp.ne.s32.totalorder %s2982_s1, %s2462_s15  ;;  %p2466_p1 = scmp.lt.u32.totalorder %s2462_s15, %s2982_s1 }
   0x8   :  { %p2468_p2 = pnand %p2466_p1, %p2463_p0 }
   0xa   :  { %2471 = shalt.err (!%p2468_p2)
}
   0xb   :  { %s2472_s20 = scalar_lea.vmem %s36_s10, 1024  ;;  %p2477_p4 = scmp.lt.s32.totalorder %s36_s10, %s36_s10 }
   0xc   :  { %p2473_p3 = scmp.ne.s32.totalorder %s36_s10, %s2472_s20  ;;  %p2478_p5 = scmp.lt.s32.totalorder %s2472_s20, %s2472_s20 }
   0xe   :  { %p2479_p6 = por %p2478_p5, %p2477_p4 }
  0x10   :  { %p2480_p7 = pnand %p2479_p6, %p2473_p3 }
  0x12   :  { %2483 = shalt.err (!%p2480_p7)
}
  0x13   :  { %s2604_s21 = smov 128   ;;  %s2605_s22 = smov 8  }
  0x14   :  { %41 = dma.hbm_to_vmem [thread:$0]  %s2982_s1, 1024, %s36_s10, [#allocation6], %s2604_s21, %s2604_s21, %s2605_s22  }
  0x15   :  { %s2484_s27 = scalar_lea.hbm %s2984_s3, 6144 }
  0x16   :  { %p2485_p8 = scmp.ne.s32.totalorder %s2984_s3, %s2484_s27  ;;  %p2488_p9 = scmp.lt.u32.totalorder %s2484_s27, %s2984_s3 }
  0x18   :  { %p2490_p10 = pnand %p2488_p9, %p2485_p8 }
  0x1a   :  { %2493 = shalt.err (!%p2490_p10)
}
  0x1b   :  { %s2494_s13 = scalar_lea.vmem %s2663_s12, 6144  ;;  %p2499_p12 = scmp.lt.s32.totalorder %s2663_s12, %s2663_s12 }
  0x1c   :  { %p2495_p11 = scmp.ne.s32.totalorder %s2663_s12, %s2494_s13  ;;  %p2500_p13 = scmp.lt.s32.totalorder %s2494_s13, %s2494_s13 }
  0x1e   :  { %p2501_p0 = por %p2500_p13, %p2499_p12 }
  0x20   :  { %p2502_p1 = pnand %p2501_p0, %p2495_p11 }
  0x22   :  { %2505 = shalt.err (!%p2502_p1)
}
  0x23   :  { %65 = dma.hbm_to_vmem [thread:$0]  %s2984_s3, 6144, %s2663_s12, [#allocation9], %s2604_s21, %s2604_s21, %s2605_s22  }
  0x24   :  { %s2606_s14 = smov [#allocation2]   ;;  %s2607_s16 = smov [#allocation7]  }
  0x25   :  { %s23_s15 = sshll.u32 %s2606_s14, 4  ;;  %s47_s17 = sshll.u32 %s2607_s16, 4  ;;  %s24_s15 = int_to_ptr.vmem [resolvable:$true] %s23_s15  ;;  %s2700_s17 = int_to_ptr.vmem [resolvable:$true] %s47_s17 }
  0x26   :  { %s2506_s20 = scalar_lea.hbm %s2981_s0, 512 }
  0x27   :  { %p2507_p2 = scmp.ne.s32.totalorder %s2981_s0, %s2506_s20  ;;  %p2510_p3 = scmp.lt.u32.totalorder %s2506_s20, %s2981_s0 }
  0x29   :  { %p2512_p4 = pnand %p2510_p3, %p2507_p2 }
  0x2b   :  { %2515 = shalt.err (!%p2512_p4)
}
  0x2c   :  { %s2516_s3 = scalar_lea.vmem %s24_s15, 512  ;;  %p2521_p6 = scmp.lt.s32.totalorder %s24_s15, %s24_s15 }
  0x2d   :  { %p2517_p5 = scmp.ne.s32.totalorder %s24_s15, %s2516_s3  ;;  %p2522_p7 = scmp.lt.s32.totalorder %s2516_s3, %s2516_s3 }
  0x2f   :  { %p2523_p8 = por %p2522_p7, %p2521_p6 }
  0x31   :  { %p2524_p9 = pnand %p2523_p8, %p2517_p5 }
  0x33   :  { %2527 = shalt.err (!%p2524_p9)
}
  0x34   :  { %29 = dma.hbm_to_vmem [thread:$0]  %s2981_s0, 512, %s24_s15, [#allocation3], %s2604_s21, %s2604_s21, %s2605_s22  }
  0x35   :  { %s2528_s30 = scalar_lea.hbm %s2983_s2, 3072 }
  0x36   :  { %p2529_p10 = scmp.ne.s32.totalorder %s2983_s2, %s2528_s30  ;;  %p2532_p11 = scmp.lt.u32.totalorder %s2528_s30, %s2983_s2 }
  0x38   :  { %p2534_p12 = pnand %p2532_p11, %p2529_p10 }
  0x3a   :  { %2537 = shalt.err (!%p2534_p12)
}
  0x3b   :  { %s2538_s14 = scalar_lea.vmem %s2700_s17, 3072  ;;  %p2543_p0 = scmp.lt.s32.totalorder %s2700_s17, %s2700_s17 }
  0x3c   :  { %p2539_p13 = scmp.ne.s32.totalorder %s2700_s17, %s2538_s14  ;;  %p2544_p1 = scmp.lt.s32.totalorder %s2538_s14, %s2538_s14 }
  0x3e   :  { %p2545_p2 = por %p2544_p1, %p2543_p0 }
  0x40   :  { %p2546_p3 = pnand %p2545_p2, %p2539_p13 }
  0x42   :  { %2549 = shalt.err (!%p2546_p3)
}
  0x43   :  { %53 = dma.hbm_to_vmem [thread:$0]  %s2983_s2, 3072, %s2700_s17, [#allocation6], %s2604_s21, %s2604_s21, %s2605_s22  }
  0x44   :  { %s2608_s16 = smov [#allocation10]   ;;  %s2550_s23 = scalar_lea.hbm %s2989_s8, 2048 }
  0x45   :  { %s79_s18 = sshll.u32 %s2608_s16, 4  ;;  %p2551_p4 = scmp.ne.s32.totalorder %s2989_s8, %s2550_s23  ;;  %s80_s18 = int_to_ptr.vmem [resolvable:$true] %s79_s18 }
  0x46   :  { %p2554_p5 = scmp.lt.u32.totalorder %s2550_s23, %s2989_s8 }
  0x48   :  { %p2556_p6 = pnand %p2554_p5, %p2551_p4 }
  0x4a   :  { %2559 = shalt.err (!%p2556_p6)
}
  0x4b   :  { %s2560_s12 = scalar_lea.vmem %s80_s18, 2048  ;;  %p2565_p8 = scmp.lt.s32.totalorder %s80_s18, %s80_s18 }
  0x4c   :  { %p2561_p7 = scmp.ne.s32.totalorder %s80_s18, %s2560_s12  ;;  %p2566_p9 = scmp.lt.s32.totalorder %s2560_s12, %s2560_s12 }
  0x4e   :  { %p2567_p10 = por %p2566_p9, %p2565_p8 }
  0x50   :  { %p2568_p11 = pnand %p2567_p10, %p2561_p7 }
  0x52   :  { %2571 = shalt.err (!%p2568_p11)
}
  0x53   :  { %85 = dma.hbm_to_vmem [thread:$0]  %s2989_s8, 2048, %s80_s18, [#allocation9], %s2604_s21, %s2604_s21, %s2605_s22  }
  0x54   :  { %2594 = dma.done.wait [#allocation3], 512  }
  0x55   :  { %2595 = vsyncadd [#allocation3], 4294966784 }
  0x56   :  { %2596 = dma.done.wait [#allocation6], 4096  }
  0x57   :  { %2597 = vsyncadd [#allocation6], 4294963200 }
  0x58   :  { %2598 = dma.done.wait [#allocation9], 8192  }
  0x59   :  { %2599 = vsyncadd [#allocation9], 4294959104  ;;  %vm127_vm0 = vcmask 261120   ;;  %v117_v0 = vld [vmem:[#allocation2] sm:$0xff]  ;;  %v2752_v1 = vld [vmem:[#allocation2 + $0x8] sm:$0xff]  ;;  %vm344_vm1 = vcmask 523264  }
  0x5a   :  { %v2754_v2 = vld [vmem:[#allocation2 + $0x10] sm:$0xff]  ;;  %v2159_v3 = vpack.c.bf16 %v2752_v1, %v117_v0  ;;  %v2757_v4 = vld [vmem:[#allocation2 + $0x18] sm:$0xff]  ;;  %v2759_v5 = vld [vmem:[#allocation5] sm:$0xff]  ;;  %v2609_v44 = vmov 0.0|0.0   ;;  %vm2610_vm2 = vmmov 0  }
  0x5b   :  { %v2163_v6 = vpack.c.bf16 %v2757_v4, %v2754_v2  ;;  %1791 = vmatprep.mubr.msk.f32.mxu0 %vm127_vm0, %v2759_v5  ;;  %v2765_v7 = vld [vmem:[#allocation5 + $0x20] sm:$0xff]  ;;  %v328_v9 = vld [vmem:[#allocation7 + $0x8] sm:$0xff]  ;;  %v329_v11 = vld [vmem:[#allocation7 + $0x10] sm:$0xff] }
  0x5c   :  { %2160 = vmatprep.subr.bf16.mxu0 %v2159_v3  ;;  %2168 = vmatprep.subr.bf16.mxu1 %v2159_v3  ;;  %v327_v8 = vld [vmem:[#allocation7] sm:$0xff]  ;;  %v330_v12 = vld [vmem:[#allocation7 + $0x18] sm:$0xff]  ;;  %v2769_v13 = vld [vmem:[#allocation5 + $0x8] sm:$0xff] }
  0x5d   :  { %2162 = vmatpush3.bf16.msra.mxu0 %v2159_v3  ;;  %2170 = vmatpush3.bf16.msra.mxu1 %v2159_v3  ;;  %v2191_v10 = vpack.c.bf16 %v328_v9, %v327_v8  ;;  %v2771_v14 = vld [vmem:[#allocation5 + $0x28] sm:$0xff]  ;;  %v2773_v15 = vld [vmem:[#allocation5 + $0x10] sm:$0xff]  ;;  %v2195_v17 = vpack.c.bf16 %v330_v12, %v329_v11  ;;  %v331_v18 = vld [vmem:[#allocation7 + $0x20] sm:$0xff] }
  0x5e   :  { %2164 = vmatprep.subr.bf16.mxu0 %v2163_v6  ;;  %2172 = vmatprep.subr.bf16.mxu1 %v2163_v6  ;;  %v2775_v16 = vld [vmem:[#allocation5 + $0x30] sm:$0xff]  ;;  %v332_v19 = vld [vmem:[#allocation7 + $0x28] sm:$0xff]  ;;  %v2783_v20 = vld [vmem:[#allocation5 + $0x18] sm:$0xff] }
  0x5f   :  { %1805 = vmatprep.mubr.msk.f32.mxu1 %vm127_vm0, %v2765_v7  ;;  %v2787_v21 = vld [vmem:[#allocation5 + $0x38] sm:$0xff]  ;;  %v2199_v22 = vpack.c.bf16 %v332_v19, %v331_v18  ;;  %v333_v23 = vld [vmem:[#allocation7 + $0x30] sm:$0xff]  ;;  %v336_v26 = vld [vmem:[#allocation7 + $0x40] sm:$0xff] }
  0x60   :  { %v334_v24 = vld [vmem:[#allocation7 + $0x38] sm:$0xff]  ;;  %v337_v27 = vld [vmem:[#allocation7 + $0x48] sm:$0xff]  ;;  %v540_v29 = vld [vmem:[#allocation7 + $0x80] sm:$0xff] }
  0x61   :  { %2166 = vmatpush3.bf16.msra.mxu0 %v2163_v6  ;;  %2174 = vmatpush3.bf16.msra.mxu1 %v2163_v6  ;;  %v2203_v25 = vpack.c.bf16 %v334_v24, %v333_v23  ;;  %v2175_v28 = vpack.c.bf16 %v337_v27, %v336_v26  ;;  %v541_v30 = vld [vmem:[#allocation7 + $0x88] sm:$0xff]  ;;  %v338_v32 = vld [vmem:[#allocation7 + $0x50] sm:$0xff]  ;;  %v339_v33 = vld [vmem:[#allocation7 + $0x58] sm:$0xff] }
  0x62   :  { %2192 = vmatprep.subr.bf16.mxu0 %v2191_v10  ;;  %v2207_v31 = vpack.c.bf16 %v541_v30, %v540_v29  ;;  %v2179_v34 = vpack.c.bf16 %v339_v33, %v338_v32  ;;  %v340_v35 = vld [vmem:[#allocation7 + $0x60] sm:$0xff]  ;;  %v341_v36 = vld [vmem:[#allocation7 + $0x68] sm:$0xff]  ;;  %v342_v38 = vld [vmem:[#allocation7 + $0x70] sm:$0xff]  ;;  %v2611_v30 = vmov 0.0  }
  0x63   :  { %2176 = vmatprep.subr.bf16.mxu1 %v2175_v28  ;;  %v2183_v37 = vpack.c.bf16 %v341_v36, %v340_v35  ;;  %v343_v39 = vld [vmem:[#allocation7 + $0x78] sm:$0xff]  ;;  %v101_v41 = vld [vmem:[#allocation10] sm:$0xff]  ;;  %v102_v42 = vld [vmem:[#allocation10 + $0x8] sm:$0xff] }
  0x64   :  { %1792 = vmatmul.mubr.msk.f32.vlgmr.msra.gmra.mrb[0].mxu0 %vm127_vm0, %v2769_v13  ;;  %1806 = vmatmul.mubr.msk.f32.vlgmr.msra.gmra.mrb[0].mxu1 %vm127_vm0, %v2771_v14  ;;  %v2187_v40 = vpack.c.bf16 %v343_v39, %v342_v38  ;;  %v103_v43 = vld [vmem:[#allocation10 + $0x10] sm:$0xff]  ;;  %v2801_v45 = vpack.c.bf16 %v102_v42, %v101_v41  ;;  %v104_v46 = vld [vmem:[#allocation10 + $0x18] sm:$0xff]  ;;  %v544_v55 = vld [vmem:[#allocation7 + $0xa0] sm:$0xff] }
  0x65   :  { %1794 = vmatprep.mubr.msk.f32.mxu0 %vm127_vm0, %v2773_v15  ;;  %1808 = vmatprep.mubr.msk.f32.mxu1 %vm127_vm0, %v2775_v16  ;;  %v2804_v47 = vpack.c.bf16 %v104_v46, %v103_v43  ;;  %v542_v48 = vld [vmem:[#allocation7 + $0x90] sm:$0xff]  ;;  %v543_v49 = vld [vmem:[#allocation7 + $0x98] sm:$0xff]  ;;  %v545_v56 = vld [vmem:[#allocation7 + $0xa8] sm:$0xff] }
  0x66   :  { %2194 = vmatpush3.bf16.msra.mxu0 %v2191_v10  ;;  %2178 = vmatpush3.bf16.msra.mxu1 %v2175_v28  ;;  %v2211_v53 = vpack.c.bf16 %v543_v49, %v542_v48  ;;  %v2215_v60 = vpack.c.bf16 %v545_v56, %v544_v55  ;;  %v546_v62 = vld [vmem:[#allocation7 + $0xb0] sm:$0xff]  ;;  %v547_v63 = vld [vmem:[#allocation7 + $0xb8] sm:$0xff]  ;;  %v113_v24 = vld [vmem:[#allocation10 + $0x60] sm:$0xff] }
  0x67   :  { %2196 = vmatprep.subr.bf16.mxu0 %v2195_v17  ;;  %2180 = vmatprep.subr.bf16.mxu1 %v2179_v34  ;;  %v107_v8 = vld [vmem:[#allocation10 + $0x30] sm:$0xff]  ;;  %v108_v9 = vld [vmem:[#allocation10 + $0x38] sm:$0xff] }
  0x68   :  { %1795 = vmatmul.mubr.msk.f32.gmra.mrb[2].mxu0 %vm127_vm0, %v2783_v20  ;;  %1809 = vmatmul.mubr.msk.f32.gmra.mrb[2].mxu1 %vm127_vm0, %v2787_v21  ;;  %v2823_v10 = vpack.c.bf16 %v108_v9, %v107_v8  ;;  %v111_v19 = vld [vmem:[#allocation10 + $0x50] sm:$0xff]  ;;  %v116_v28 = vld [vmem:[#allocation10 + $0x78] sm:$0xff] }
  0x69   :  { %1827 = vmatprep.mubr.msk.f32.mxu1 %vm344_vm1, %v117_v0  ;;  %v2219_v0 = vpack.c.bf16 %v547_v63, %v546_v62  ;;  %v115_v27 = vld [vmem:[#allocation10 + $0x70] sm:$0xff] }
  0x6a   :  { %2198 = vmatpush3.bf16.msra.mxu0 %v2195_v17  ;;  %2182 = vmatpush3.bf16.msra.mxu1 %v2179_v34  ;;  %v110_v17 = vld [vmem:[#allocation10 + $0x48] sm:$0xff]  ;;  %v2839_v29 = vpack.c.bf16 %v116_v28, %v115_v27  ;;  %v122_v27 = vld [vmem:[%s2986_s5] sm:$0x1] }
  0x6b   :  { %2200 = vmatprep.subr.bf16.mxu0 %v2199_v22  ;;  %2184 = vmatprep.subr.bf16.mxu1 %v2183_v37 }
  0x6e   :  { %2202 = vmatpush3.bf16.msra.mxu0 %v2199_v22  ;;  %2186 = vmatpush3.bf16.msra.mxu1 %v2183_v37  ;;  %v112_v22 = vld [vmem:[#allocation10 + $0x58] sm:$0xff] }
  0x6f   :  { %2204 = vmatprep.subr.bf16.mxu0 %v2203_v25  ;;  %2188 = vmatprep.subr.bf16.mxu1 %v2187_v40  ;;  %v2831_v23 = vpack.c.bf16 %v112_v22, %v111_v19  ;;  %v121_v19 = vld [vmem:[%s2985_s4] sm:$0x1] }
  0x72   :  { %2206 = vmatpush3.bf16.msra.mxu0 %v2203_v25  ;;  %2190 = vmatpush3.bf16.msra.mxu1 %v2187_v40  ;;  %v114_v25 = vld [vmem:[#allocation10 + $0x68] sm:$0xff] }
  0x73   :  { %2208 = vmatprep.subr.bf16.mxu0 %v2207_v31  ;;  %2223 = vmatprep.subr.bf16.mxu1 %v2609_v44  ;;  %v2835_v26 = vpack.c.bf16 %v114_v25, %v113_v24 }
  0x75   :  { %1828 = vmatmul.mubr.msk.f32.vlgmr.msra.gmra.mrb[4].mxu1 %vm344_vm1, %v2752_v1  ;;  %v105_v1 = vld [vmem:[#allocation10 + $0x20] sm:$0xff] }
  0x76   :  { %1830 = vmatprep.mubr.msk.f32.mxu1 %vm344_vm1, %v2754_v2  ;;  %2225 = vmatpush3.bf16.msra.mxu1 %v2801_v45  ;;  %v106_v2 = vld [vmem:[#allocation10 + $0x28] sm:$0xff] }
  0x77   :  { %2226 = vmatprep.subr.bf16.mxu1 %v2609_v44  ;;  %v2819_v3 = vpack.c.bf16 %v106_v2, %v105_v1 }
  0x79   :  { %1831 = vmatmul.mubr.msk.f32.gmra.mrb[6].mxu1 %vm344_vm1, %v2757_v4 }
  0x7a   :  { %2228 = vmatpush3.bf16.msra.mxu1 %v2804_v47  ;;  %1909 = vmatprep.mubr.msk.f32.mxu1 %vm2610_vm2, %v2611_v30 }
  0x7b   :  { %2229 = vmatprep.subr.bf16.mxu1 %v2609_v44 }
  0x7e   :  { %2231 = vmatpush3.bf16.msra.mxu1 %v2819_v3 }
  0x7f   :  { %2232 = vmatprep.subr.bf16.mxu1 %v2609_v44 }
  0x82   :  { %2234 = vmatpush3.bf16.msra.mxu1 %v2823_v10 }
  0x83   :  { %2235 = vmatprep.subr.bf16.mxu1 %v2609_v44 }
 0x137   :  { %v1793_v50 = vpop.f32.mrb[0].mxu0  ;;  %v1807_v51 = vpop.f32.mrb[0].mxu1 }
 0x138   :  { %v206_v52 = vpop.f32.mrb[1].mxu0  ;;  %v308_v54 = vpop.f32.mrb[1].mxu1 }
 0x139   :  { %1849 = vmatprep.mubr.msk.f32.mxu0 %vm344_vm1, %v206_v52 }
 0x13a   :  { %1850 = vmatmul.mubr.msk.f32.vlgmr.msra.gmra.mrb[4].mxu0 %vm344_vm1, %v1793_v50 }
 0x13b   :  { %2210 = vmatpush3.bf16.msra.mxu0 %v2207_v31  ;;  %v1796_v57 = vpop.f32.mrb[2].mxu0  ;;  %v1810_v58 = vpop.f32.mrb[2].mxu1 }
 0x13c   :  { %2212 = vmatprep.subr.bf16.mxu0 %v2211_v53  ;;  %v216_v59 = vpop.f32.mrb[3].mxu0  ;;  %v318_v61 = vpop.f32.mrb[3].mxu1 }
 0x13d   :  { %1852 = vmatprep.mubr.msk.f32.mxu0 %vm344_vm1, %v216_v59 }
 0x13e   :  { %1853 = vmatmul.mubr.msk.f32.gmra.mrb[6].mxu0 %vm344_vm1, %v1796_v57 }
 0x13f   :  { %2214 = vmatpush3.bf16.msra.mxu0 %v2211_v53  ;;  %1871 = vmatprep.mubr.msk.f32.mxu0 %vm344_vm1, %v308_v54 }
 0x140   :  { %2216 = vmatprep.subr.bf16.mxu0 %v2215_v60 }
 0x143   :  { %2218 = vmatpush3.bf16.msra.mxu0 %v2215_v60 }
 0x144   :  { %2220 = vmatprep.subr.bf16.mxu0 %v2219_v0 }
 0x147   :  { %2222 = vmatpush3.bf16.msra.mxu0 %v2219_v0 }
 0x148   :  { %v1829_v4 = vpop.f32.mrb[4].mxu1 }
 0x149   :  { %v423_v6 = vpop.f32.mrb[5].mxu1 }
 0x14a   :  { %1872 = vmatmul.mubr.msk.f32.vlgmr.msra.gmra.mrb[4].mxu0 %vm344_vm1, %v1807_v51 }
 0x14b   :  { %1874 = vmatprep.mubr.msk.f32.mxu0 %vm344_vm1, %v318_v61 }
 0x14c   :  { %v1832_v11 = vpop.f32.mrb[6].mxu1 }
 0x14d   :  { %v433_v12 = vpop.f32.mrb[7].mxu1 }
 0x14e   :  { %1875 = vmatmul.mubr.msk.f32.gmra.mrb[6].mxu0 %vm344_vm1, %v1810_v58 }
 0x14f   :  { %1955 = vmatprep.mubr.msk.f32.mxu0 %vm127_vm0, %v2759_v5  ;;  %v109_v5 = vld [vmem:[#allocation10 + $0x40] sm:$0xff] }
 0x150   :  { %v2827_v18 = vpack.c.bf16 %v110_v17, %v109_v5  ;;  %v821_v5 = vlaneseq }
 0x152   :  { %2237 = vmatpush3.bf16.msra.mxu1 %v2827_v18  ;;  %v822_v17 = vshrl.u32 %v821_v5, 7  ;;  %v1025_v5 = vld [vmem:[#allocation8 + $0x8] sm:$0xff] }
 0x153   :  { %2238 = vmatprep.subr.bf16.mxu1 %v2609_v44 }
 0x154   :  { %v2904_v22 = vsub.s32 0, %v822_v17 }
 0x156   :  { %2240 = vmatpush3.bf16.msra.mxu1 %v2831_v23 }
 0x157   :  { %2241 = vmatprep.subr.bf16.mxu1 %v2609_v44 }
 0x15a   :  { %2243 = vmatpush3.bf16.msra.mxu1 %v2835_v26 }
 0x15b   :  { %2244 = vmatprep.subr.bf16.mxu1 %v2609_v44 }
 0x15e   :  { %2246 = vmatpush3.bf16.msra.mxu1 %v2839_v29 }
 0x15f   :  { %2247 = vmatprep.subr.bf16.mxu1 %v2609_v44 }
 0x21d   :  { %v1873_v31 = vpop.f32.mrb[4].mxu0 }
 0x21e   :  { %v2845_v32 = vadd.f32 %v1873_v31, %v1829_v4  ;;  %v626_v33 = vpop.f32.mrb[5].mxu0 }
 0x21f   :  { %v2847_v34 = vadd.f32 %v626_v33, %v423_v6 }
 0x220   :  { %v659_v49 = vmul.f32 %v2845_v32, %v2845_v32 }
 0x221   :  { %v1876_v35 = vpop.f32.mrb[6].mxu0  ;;  %v649_v38 = vadd.f32 %v2847_v34, %v2845_v32  ;;  %v658_v50 = vmul.f32 %v2847_v34, %v2847_v34 }
 0x222   :  { %v2849_v36 = vadd.f32 %v1876_v35, %v1832_v11  ;;  %v636_v37 = vpop.f32.mrb[7].mxu0 }
 0x223   :  { %v2853_v39 = vadd.f32 %v636_v37, %v433_v12  ;;  %v662_v54 = vadd.f32 %v659_v49, %v658_v50 }
 0x224   :  { %v661_v56 = vmul.f32 %v2849_v36, %v2849_v36 }
 0x225   :  { %v650_v40 = vadd.f32 %v2853_v39, %v649_v38  ;;  %v660_v52 = vmul.f32 %v2853_v39, %v2853_v39 }
 0x227   :  { %v651_v41 = vadd.f32 %v2849_v36, %v650_v40  ;;  %v663_v55 = vadd.f32 %v662_v54, %v660_v52 }
 0x229   :  { %v652_v42 = vrot.slane %v651_v41, 4  ;;  %v664_v57 = vadd.f32 %v663_v55, %v661_v56  ;;  %v1041_v55 = vld [vmem:[#allocation8 + $0x80] sm:$0xff]  ;;  %v1042_v56 = vld [vmem:[#allocation8 + $0x88] sm:$0xff] }
 0x22b   :  { %v653_v43 = vadd.f32 %v652_v42, %v651_v41  ;;  %v665_v58 = vrot.slane %v664_v57, 4 }
 0x22d   :  { %v654_v46 = vrot.slane %v653_v43, 2  ;;  %v666_v59 = vadd.f32 %v665_v58, %v664_v57  ;;  %v2287_v57 = vpack.c.bf16 %v1042_v56, %v1041_v55  ;;  %v1043_v58 = vld [vmem:[#allocation8 + $0x90] sm:$0xff] }
 0x22f   :  { %v655_v48 = vadd.f32 %v654_v46, %v653_v43  ;;  %v667_v60 = vrot.slane %v666_v59, 2 }
 0x231   :  { %v656_v51 = vrot.slane %v655_v48, 1  ;;  %v668_v61 = vadd.f32 %v667_v60, %v666_v59  ;;  %v1044_v59 = vld [vmem:[#allocation8 + $0x98] sm:$0xff] }
 0x232   :  { %v2291_v60 = vpack.c.bf16 %v1044_v59, %v1043_v58  ;;  %v1232_v58 = vld [vmem:[#allocation8 + $0x120] sm:$0xff]  ;;  %v1233_v59 = vld [vmem:[#allocation8 + $0x128] sm:$0xff] }
 0x233   :  { %v657_v53 = vadd.f32 %v656_v51, %v655_v48  ;;  %v669_v62 = vrot.slane %v668_v61, 1 }
 0x235   :  { %1910 = vmatmul.mubr.f32.vlgmr.msra.gmra.mrb[8].mxu1 %v657_v53  ;;  %v670_v63 = vadd.f32 %v669_v62, %v668_v61  ;;  %v1045_v61 = vld [vmem:[#allocation8 + $0xa0] sm:$0xff]  ;;  %v1046_v62 = vld [vmem:[#allocation8 + $0xa8] sm:$0xff] }
 0x236   :  { %2249 = vmatpush3.bf16.msra.mxu1 %v2801_v45  ;;  %1944 = vmatprep.mubr.msk.f32.mxu1 %vm2610_vm2, %v2611_v30 }
 0x237   :  { %2250 = vmatprep.subr.bf16.mxu1 %v2609_v44 }
 0x23a   :  { %2252 = vmatpush3.bf16.msra.mxu1 %v2804_v47 }
 0x23b   :  { %2253 = vmatprep.subr.bf16.mxu1 %v2609_v44 }
 0x23e   :  { %2255 = vmatpush3.bf16.msra.mxu1 %v2819_v3 }
 0x23f   :  { %2256 = vmatprep.subr.bf16.mxu1 %v2609_v44 }
 0x242   :  { %2258 = vmatpush3.bf16.msra.mxu1 %v2823_v10 }
 0x243   :  { %2259 = vmatprep.subr.bf16.mxu1 %v2609_v44 }
 0x246   :  { %2261 = vmatpush3.bf16.msra.mxu1 %v2827_v18 }
 0x247   :  { %2262 = vmatprep.subr.bf16.mxu1 %v2609_v44 }
 0x24a   :  { %2264 = vmatpush3.bf16.msra.mxu1 %v2831_v23 }
 0x24b   :  { %2265 = vmatprep.subr.bf16.mxu1 %v2609_v44 }
 0x24e   :  { %2267 = vmatpush3.bf16.msra.mxu1 %v2835_v26 }
 0x24f   :  { %2268 = vmatprep.subr.bf16.mxu1 %v2609_v44 }
 0x252   :  { %2270 = vmatpush3.bf16.msra.mxu1 %v2839_v29 }
 0x253   :  { %2383 = vmatprep.subr.bf16.mxu1 %v2609_v44 }
 0x255   :  { %1945 = vmatmul.mubr.f32.vlgmr.msra.gmra.mrb[10].mxu1 %v670_v63  ;;  %v1048_v63 = vld [vmem:[#allocation8 + $0xb8] sm:$0xff] }
 0x256   :  { %2385 = vmatpush3.bf16.msra.mxu1 %v2801_v45  ;;  %2121 = vmatprep.mubr.msk.f32.mxu1 %vm2610_vm2, %v2611_v30 }
 0x257   :  { %2386 = vmatprep.subr.bf16.mxu1 %v2609_v44 }
 0x25a   :  { %2388 = vmatpush3.bf16.msra.mxu1 %v2804_v47 }
 0x25b   :  { %2389 = vmatprep.subr.bf16.mxu1 %v2609_v44 }
 0x25e   :  { %2391 = vmatpush3.bf16.msra.mxu1 %v2819_v3 }
 0x25f   :  { %2392 = vmatprep.subr.bf16.mxu1 %v2609_v44 }
 0x262   :  { %2394 = vmatpush3.bf16.msra.mxu1 %v2823_v10 }
 0x263   :  { %2395 = vmatprep.subr.bf16.mxu1 %v2609_v44 }
 0x266   :  { %2397 = vmatpush3.bf16.msra.mxu1 %v2827_v18 }
 0x267   :  { %2398 = vmatprep.subr.bf16.mxu1 %v2609_v44 }
 0x26a   :  { %2400 = vmatpush3.bf16.msra.mxu1 %v2831_v23 }
 0x26b   :  { %2401 = vmatprep.subr.bf16.mxu1 %v2609_v44 }
 0x26e   :  { %2403 = vmatpush3.bf16.msra.mxu1 %v2835_v26 }
 0x26f   :  { %2404 = vmatprep.subr.bf16.mxu1 %v2609_v44 }
 0x272   :  { %2406 = vmatpush3.bf16.msra.mxu1 %v2839_v29 }
 0x273   :  { %2407 = vmatprep.subr.bf16.mxu1 %v2609_v44 }
 0x308   :  { %v737_v0 = vpop.f32.mrb[8].mxu1 }
 0x309   :  { %v1911_v1 = vpop.f32.mrb[9].mxu1  ;;  %v741_v2 = vmul.f32 0.001953125, %v737_v0  ;;  %v1050_v0 = vld [vmem:[#allocation8 + $0xc8] sm:$0xff] }
 0x30a   :  { %v1051_v1 = vld [vmem:[#allocation8 + $0xd0] sm:$0xff] }
 0x30b   :  { %v813_v6 = vmul.f32 %v741_v2, %v741_v2 }
 0x328   :  { %v808_v4 = vpop.f32.mrb[10].mxu1 }
 0x329   :  { %v812_v8 = vmul.f32 0.001953125, %v808_v4  ;;  %v1946_v9 = vpop.f32.mrb[11].mxu1  ;;  %v1053_v4 = vld [vmem:[#allocation8 + $0xe0] sm:$0xff] }
 0x32a   :  { %v1056_v9 = vld [vmem:[#allocation8 + $0xf8] sm:$0xff] }
 0x32b   :  { %v814_v11 = vsub.f32 %v812_v8, %v813_v6  ;;  %v1054_v6 = vld [vmem:[#allocation8 + $0xe8] sm:$0xff] }
 0x32c   :  { %v2311_v8 = vpack.c.bf16 %v1054_v6, %v1053_v4  ;;  %v1238_v4 = vld [vmem:[#allocation8 + $0x150] sm:$0xff]  ;;  %v1239_v6 = vld [vmem:[#allocation8 + $0x158] sm:$0xff] }
 0x32d   :  { %v815_v12 = vadd.f32 1e-05, %v814_v11 }
 0x32f   :  { %2458 = vrsqrt.f32 %v815_v12  ;;  %v1024_v12 = vld [vmem:[#allocation8] sm:$0xff] }
 0x330   :  { %v2319_v17 = vpack.c.bf16 %v1025_v5, %v1024_v12  ;;  %v1242_v12 = vld [vmem:[#allocation8 + $0x170] sm:$0xff]  ;;  %v1243_v5 = vld [vmem:[#allocation8 + $0x178] sm:$0xff] }
 0x339   :  { %v2459_v24 = vpop.eup %2458 }
 0x33a   :  { %v817_v25 = vmul.f32 %v2459_v24, %v121_v19  ;;  %v1026_v19 = vld [vmem:[#allocation8 + $0x10] sm:$0xff]  ;;  %v1027_v24 = vld [vmem:[#allocation8 + $0x18] sm:$0xff] }
 0x33c   :  { %v818_v28 = vmul.f32 %v817_v25, %v741_v2  ;;  %v824_v31 = vrot.slane %v817_v25, %v2904_v22  ;;  %v1052_v2 = vld [vmem:[#allocation8 + $0xd8] sm:$0xff]  ;;  %v2323_v25 = vpack.c.bf16 %v1027_v24, %v1026_v19 }
 0x33e   :  { %v819_v33 = vsub.f32 %v122_v27, %v818_v28  ;;  %v826_v35 = vmul.f32 %v2847_v34, %v824_v31  ;;  %v827_v38 = vmul.f32 %v2845_v32, %v824_v31  ;;  %v828_v40 = vmul.f32 %v2853_v39, %v824_v31  ;;  %v1028_v27 = vld [vmem:[#allocation8 + $0x20] sm:$0xff]  ;;  %v1029_v28 = vld [vmem:[#allocation8 + $0x28] sm:$0xff] }
 0x33f   :  { %v829_v41 = vmul.f32 %v2849_v36, %v824_v31  ;;  %v2327_v31 = vpack.c.bf16 %v1029_v28, %v1028_v27 }
 0x340   :  { %v834_v37 = vrot.slane %v819_v33, %v2904_v22  ;;  %v1030_v33 = vld [vmem:[#allocation8 + $0x30] sm:$0xff] }
 0x342   :  { %v836_v42 = vadd.f32 %v834_v37, %v826_v35  ;;  %v837_v43 = vadd.f32 %v834_v37, %v827_v38  ;;  %v838_v46 = vadd.f32 %v834_v37, %v828_v40  ;;  %v839_v48 = vadd.f32 %v834_v37, %v829_v41  ;;  %v1031_v35 = vld [vmem:[#allocation8 + $0x38] sm:$0xff]  ;;  %v1032_v38 = vld [vmem:[#allocation8 + $0x40] sm:$0xff]  ;;  %v1033_v40 = vld [vmem:[#allocation8 + $0x48] sm:$0xff] }
 0x343   :  { %v2331_v37 = vpack.c.bf16 %v1031_v35, %v1030_v33  ;;  %v2335_v41 = vpack.c.bf16 %v1033_v40, %v1032_v38 }
 0x344   :  { %vm840_vm3 = vcmp.gt.f32.partialorder %v836_v42, 0.0  ;;  %vm841_vm4 = vcmp.gt.f32.partialorder %v837_v43, 0.0  ;;  %v844_v49 = vmul.f32 0.01, %v836_v42  ;;  %v845_v50 = vmul.f32 0.01, %v837_v43 }
 0x345   :  { %vm842_vm5 = vcmp.gt.f32.partialorder %v838_v46, 0.0  ;;  %vm843_vm6 = vcmp.gt.f32.partialorder %v839_v48, 0.0  ;;  %v846_v51 = vmul.f32 0.01, %v838_v46  ;;  %v847_v34 = vmul.f32 0.01, %v839_v48 }
 0x346   :  { %v848_v52 = vsel %vm840_vm3, %v836_v42, %v844_v49  ;;  %v2915_v53 = vsel %vm841_vm4, %v837_v43, %v845_v50  ;;  %v1034_v42 = vld [vmem:[#allocation8 + $0x50] sm:$0xff]  ;;  %v1035_v43 = vld [vmem:[#allocation8 + $0x58] sm:$0xff]  ;;  %v1037_v49 = vld [vmem:[#allocation8 + $0x68] sm:$0xff] }
 0x347   :  { %v2271_v32 = vpack.c.bf16 %v2915_v53, %v848_v52  ;;  %v2918_v39 = vsel %vm842_vm5, %v838_v46, %v846_v51  ;;  %v2920_v36 = vsel %vm843_vm6, %v839_v48, %v847_v34  ;;  %v2339_v46 = vpack.c.bf16 %v1035_v43, %v1034_v42  ;;  %v1036_v48 = vld [vmem:[#allocation8 + $0x60] sm:$0xff]  ;;  %v1038_v51 = vld [vmem:[#allocation8 + $0x70] sm:$0xff]  ;;  %v1039_v34 = vld [vmem:[#allocation8 + $0x78] sm:$0xff] }
 0x348   :  { %v2275_v54 = vpack.c.bf16 %v2920_v36, %v2918_v39  ;;  %v2343_v50 = vpack.c.bf16 %v1037_v49, %v1036_v48 }
 0x349   :  { %2272 = vmatprep.subr.bf16.mxu0 %v2271_v32 }
 0x34a   :  { %2274 = vmatpush3.bf16.msra.mxu0 %v2271_v32 }
 0x34b   :  { %2276 = vmatprep.subr.bf16.mxu0 %v2275_v54 }
 0x34e   :  { %2278 = vmatpush3.bf16.msra.mxu0 %v2275_v54 }
 0x34f   :  { %2280 = vmatprep.subr.bf16.mxu0 %v2271_v32 }
 0x351   :  { %1956 = vmatmul.mubr.msk.f32.vlgmr.msra.gmra.mrb[8].mxu0 %vm127_vm0, %v2769_v13  ;;  %v2295_v13 = vpack.c.bf16 %v1046_v62, %v1045_v61  ;;  %v2359_v61 = vpack.c.bf16 %v1233_v59, %v1232_v58 }
 0x352   :  { %2282 = vmatpush3.bf16.msra.mxu0 %v2271_v32  ;;  %1958 = vmatprep.mubr.msk.f32.mxu0 %vm127_vm0, %v2773_v15  ;;  %v1047_v15 = vld [vmem:[#allocation8 + $0xb0] sm:$0xff]  ;;  %v1229_v32 = vld [vmem:[#allocation8 + $0x108] sm:$0xff] }
 0x353   :  { %2284 = vmatprep.subr.bf16.mxu0 %v2275_v54 }
 0x355   :  { %1959 = vmatmul.mubr.msk.f32.gmra.mrb[10].mxu0 %vm127_vm0, %v2783_v20  ;;  %v1049_v20 = vld [vmem:[#allocation8 + $0xc0] sm:$0xff] }
 0x356   :  { %2286 = vmatpush3.bf16.msra.mxu0 %v2275_v54  ;;  %1969 = vmatprep.mubr.msk.f32.mxu0 %vm127_vm0, %v2765_v7  ;;  %v2299_v7 = vpack.c.bf16 %v1048_v63, %v1047_v15  ;;  %v1231_v54 = vld [vmem:[#allocation8 + $0x118] sm:$0xff] }
 0x357   :  { %2288 = vmatprep.subr.bf16.mxu0 %v2287_v57  ;;  %v1235_v15 = vld [vmem:[#allocation8 + $0x138] sm:$0xff] }
 0x359   :  { %1970 = vmatmul.mubr.msk.f32.vlgmr.msra.gmra.mrb[12].mxu0 %vm127_vm0, %v2771_v14  ;;  %v2303_v14 = vpack.c.bf16 %v1050_v0, %v1049_v20  ;;  %v1236_v0 = vld [vmem:[#allocation8 + $0x140] sm:$0xff] }
 0x35a   :  { %2290 = vmatpush3.bf16.msra.mxu0 %v2287_v57  ;;  %1972 = vmatprep.mubr.msk.f32.mxu0 %vm127_vm0, %v2775_v16  ;;  %v2307_v16 = vpack.c.bf16 %v1052_v2, %v1051_v1 }
 0x35b   :  { %2292 = vmatprep.subr.bf16.mxu0 %v2291_v60 }
 0x35d   :  { %1973 = vmatmul.mubr.msk.f32.gmra.mrb[14].mxu0 %vm127_vm0, %v2787_v21  ;;  %v1055_v21 = vld [vmem:[#allocation8 + $0xf0] sm:$0xff] }
 0x35e   :  { %2294 = vmatpush3.bf16.msra.mxu0 %v2291_v60  ;;  %2007 = vmatprep.mubr.f32.mxu0 %v848_v52  ;;  %v2315_v11 = vpack.c.bf16 %v1056_v9, %v1055_v21  ;;  %v2347_v52 = vpack.c.bf16 %v1039_v34, %v1038_v51  ;;  %v1240_v21 = vld [vmem:[#allocation8 + $0x160] sm:$0xff]  ;;  %v1241_v9 = vld [vmem:[#allocation8 + $0x168] sm:$0xff] }
 0x35f   :  { %2296 = vmatprep.subr.bf16.mxu0 %v2295_v13 }
 0x362   :  { %2298 = vmatpush3.bf16.msra.mxu0 %v2295_v13  ;;  %v1234_v13 = vld [vmem:[#allocation8 + $0x130] sm:$0xff] }
 0x363   :  { %2300 = vmatprep.subr.bf16.mxu0 %v2299_v7 }
 0x366   :  { %2302 = vmatpush3.bf16.msra.mxu0 %v2299_v7  ;;  %v2363_v7 = vpack.c.bf16 %v1235_v15, %v1234_v13 }
 0x367   :  { %2304 = vmatprep.subr.bf16.mxu0 %v2303_v14 }
 0x36a   :  { %2306 = vmatpush3.bf16.msra.mxu0 %v2303_v14  ;;  %v1237_v14 = vld [vmem:[#allocation8 + $0x148] sm:$0xff] }
 0x36b   :  { %2308 = vmatprep.subr.bf16.mxu0 %v2307_v16  ;;  %v2367_v2 = vpack.c.bf16 %v1237_v14, %v1236_v0 }
 0x36e   :  { %2310 = vmatpush3.bf16.msra.mxu0 %v2307_v16 }
 0x36f   :  { %2312 = vmatprep.subr.bf16.mxu0 %v2311_v8 }
 0x372   :  { %2314 = vmatpush3.bf16.msra.mxu0 %v2311_v8  ;;  %v2371_v8 = vpack.c.bf16 %v1239_v6, %v1238_v4 }
 0x373   :  { %2316 = vmatprep.subr.bf16.mxu0 %v2315_v11 }
 0x376   :  { %2318 = vmatpush3.bf16.msra.mxu0 %v2315_v11  ;;  %v2375_v11 = vpack.c.bf16 %v1241_v9, %v1240_v21 }
 0x377   :  { %2320 = vmatprep.subr.bf16.mxu0 %v2319_v17 }
 0x379   :  { %2008 = vmatmul.mubr.f32.vlgmr.msra.gmra.mrb[16].mxu0 %v2915_v53  ;;  %v1228_v53 = vld [vmem:[#allocation8 + $0x100] sm:$0xff] }
 0x37a   :  { %2010 = vmatprep.mubr.f32.mxu0 %v2918_v39  ;;  %2322 = vmatpush3.bf16.msra.mxu0 %v2319_v17  ;;  %v2351_v39 = vpack.c.bf16 %v1229_v32, %v1228_v53  ;;  %v2379_v17 = vpack.c.bf16 %v1243_v5, %v1242_v12 }
 0x37b   :  { %2324 = vmatprep.subr.bf16.mxu0 %v2323_v25 }
 0x37d   :  { %2011 = vmatmul.mubr.f32.gmra.mrb[18].mxu0 %v2920_v36  ;;  %v1230_v36 = vld [vmem:[#allocation8 + $0x110] sm:$0xff] }
 0x37e   :  { %2326 = vmatpush3.bf16.msra.mxu0 %v2323_v25  ;;  %v2355_v57 = vpack.c.bf16 %v1231_v54, %v1230_v36 }
 0x37f   :  { %2328 = vmatprep.subr.bf16.mxu0 %v2327_v31 }
 0x382   :  { %2330 = vmatpush3.bf16.msra.mxu0 %v2327_v31 }
 0x383   :  { %2332 = vmatprep.subr.bf16.mxu0 %v2331_v37 }
 0x386   :  { %2334 = vmatpush3.bf16.msra.mxu0 %v2331_v37 }
 0x387   :  { %2336 = vmatprep.subr.bf16.mxu0 %v2335_v41 }
 0x38a   :  { %2338 = vmatpush3.bf16.msra.mxu0 %v2335_v41 }
 0x38b   :  { %2340 = vmatprep.subr.bf16.mxu0 %v2339_v46 }
 0x38e   :  { %2342 = vmatpush3.bf16.msra.mxu0 %v2339_v46 }
 0x38f   :  { %2344 = vmatprep.subr.bf16.mxu0 %v2343_v50 }
 0x392   :  { %2346 = vmatpush3.bf16.msra.mxu0 %v2343_v50 }
 0x393   :  { %2348 = vmatprep.subr.bf16.mxu0 %v2347_v52 }
 0x396   :  { %2350 = vmatpush3.bf16.msra.mxu0 %v2347_v52 }
 0x397   :  { %2352 = vmatprep.subr.bf16.mxu0 %v2351_v39 }
 0x424   :  { %v1957_v55 = vpop.f32.mrb[8].mxu0 }
 0x425   :  { %v920_v56 = vpop.f32.mrb[9].mxu0 }
 0x426   :  { %2045 = vmatprep.mubr.f32.mxu0 %v920_v56 }
 0x427   :  { %2046 = vmatmul.mubr.f32.vlgmr.msra.gmra.mrb[16].mxu0 %v1957_v55 }
 0x428   :  { %2354 = vmatpush3.bf16.msra.mxu0 %v2351_v39  ;;  %v1960_v60 = vpop.f32.mrb[10].mxu0 }
 0x429   :  { %2356 = vmatprep.subr.bf16.mxu0 %v2355_v57  ;;  %v930_v62 = vpop.f32.mrb[11].mxu0 }
 0x42a   :  { %2048 = vmatprep.mubr.f32.mxu0 %v930_v62 }
 0x42b   :  { %2049 = vmatmul.mubr.f32.gmra.mrb[18].mxu0 %v1960_v60 }
 0x42c   :  { %2358 = vmatpush3.bf16.msra.mxu0 %v2355_v57  ;;  %v1971_v63 = vpop.f32.mrb[12].mxu0 }
 0x42d   :  { %2360 = vmatprep.subr.bf16.mxu0 %v2359_v61  ;;  %v1005_v20 = vpop.f32.mrb[13].mxu0 }
 0x42e   :  { %2083 = vmatprep.mubr.f32.mxu0 %v1005_v20 }
 0x430   :  { %2362 = vmatpush3.bf16.msra.mxu0 %v2359_v61  ;;  %v1974_v1 = vpop.f32.mrb[14].mxu0 }
 0x431   :  { %2364 = vmatprep.subr.bf16.mxu0 %v2363_v7  ;;  %v1015_v16 = vpop.f32.mrb[15].mxu0 }
 0x434   :  { %2366 = vmatpush3.bf16.msra.mxu0 %v2363_v7 }
 0x435   :  { %2368 = vmatprep.subr.bf16.mxu0 %v2367_v2 }
 0x438   :  { %2370 = vmatpush3.bf16.msra.mxu0 %v2367_v2 }
 0x439   :  { %2372 = vmatprep.subr.bf16.mxu0 %v2371_v8 }
 0x43c   :  { %2374 = vmatpush3.bf16.msra.mxu0 %v2371_v8 }
 0x43d   :  { %2376 = vmatprep.subr.bf16.mxu0 %v2375_v11 }
 0x440   :  { %2378 = vmatpush3.bf16.msra.mxu0 %v2375_v11 }
 0x441   :  { %2380 = vmatprep.subr.bf16.mxu0 %v2379_v17 }
 0x444   :  { %2382 = vmatpush3.bf16.msra.mxu0 %v2379_v17 }
 0x447   :  { %2084 = vmatmul.mubr.f32.vlgmr.msra.gmra.mrb[16].mxu0 %v1971_v63 }
 0x448   :  { %2086 = vmatprep.mubr.f32.mxu0 %v1015_v16 }
 0x44b   :  { %2087 = vmatmul.mubr.f32.gmra.mrb[18].mxu0 %v1974_v1 }
 0x51a   :  { %v2085_v19 = vpop.f32.mrb[16].mxu0 }
 0x51b   :  { %v1343_v24 = vmul.f32 %v2085_v19, %v2085_v19  ;;  %v1310_v25 = vpop.f32.mrb[17].mxu0 }
 0x51c   :  { %v1333_v27 = vadd.f32 %v2085_v19, %v1310_v25  ;;  %v1342_v28 = vmul.f32 %v1310_v25, %v1310_v25 }
 0x51e   :  { %v1346_v31 = vadd.f32 %v1343_v24, %v1342_v28  ;;  %v2088_v33 = vpop.f32.mrb[18].mxu0 }
 0x51f   :  { %v1320_v35 = vpop.f32.mrb[19].mxu0  ;;  %v1345_v40 = vmul.f32 %v2088_v33, %v2088_v33 }
 0x520   :  { %v1334_v37 = vadd.f32 %v1333_v27, %v1320_v35  ;;  %v1344_v38 = vmul.f32 %v1320_v35, %v1320_v35 }
 0x522   :  { %v1335_v41 = vadd.f32 %v2088_v33, %v1334_v37  ;;  %v1347_v42 = vadd.f32 %v1346_v31, %v1344_v38 }
 0x524   :  { %v1336_v43 = vrot.slane %v1335_v41, 4  ;;  %v1348_v46 = vadd.f32 %v1347_v42, %v1345_v40 }
 0x526   :  { %v1337_v48 = vadd.f32 %v1336_v43, %v1335_v41  ;;  %v1349_v52 = vrot.slane %v1348_v46, 4 }
 0x528   :  { %v1338_v49 = vrot.slane %v1337_v48, 2  ;;  %v1350_v53 = vadd.f32 %v1349_v52, %v1348_v46 }
 0x52a   :  { %v1339_v50 = vadd.f32 %v1338_v49, %v1337_v48 }
 0x52c   :  { %v1340_v51 = vrot.slane %v1339_v50, 1 }
 0x52e   :  { %v1341_v34 = vadd.f32 %v1340_v51, %v1339_v50 }
 0x530   :  { %2122 = vmatmul.mubr.f32.vlgmr.msra.gmra.mrb[12].mxu1 %v1341_v34 }
 0x531   :  { %2409 = vmatpush3.bf16.msra.mxu1 %v2801_v45  ;;  %2156 = vmatprep.mubr.msk.f32.mxu1 %vm2610_vm2, %v2611_v30  ;;  %v1351_v45 = vrot.slane %v1350_v53, 2 }
 0x532   :  { %2410 = vmatprep.subr.bf16.mxu1 %v2609_v44 }
 0x535   :  { %2412 = vmatpush3.bf16.msra.mxu1 %v2804_v47  ;;  %v1352_v47 = vadd.f32 %v1351_v45, %v1350_v53 }
 0x536   :  { %2413 = vmatprep.subr.bf16.mxu1 %v2609_v44 }
 0x539   :  { %2415 = vmatpush3.bf16.msra.mxu1 %v2819_v3  ;;  %v1353_v3 = vrot.slane %v1352_v47, 1 }
 0x53a   :  { %2416 = vmatprep.subr.bf16.mxu1 %v2609_v44 }
 0x53d   :  { %2418 = vmatpush3.bf16.msra.mxu1 %v2823_v10  ;;  %v1354_v10 = vadd.f32 %v1353_v3, %v1352_v47 }
 0x53e   :  { %2419 = vmatprep.subr.bf16.mxu1 %v2609_v44 }
 0x541   :  { %2421 = vmatpush3.bf16.msra.mxu1 %v2827_v18 }
 0x542   :  { %2422 = vmatprep.subr.bf16.mxu1 %v2609_v44 }
 0x545   :  { %2424 = vmatpush3.bf16.msra.mxu1 %v2831_v23 }
 0x546   :  { %2425 = vmatprep.subr.bf16.mxu1 %v2609_v44 }
 0x549   :  { %2427 = vmatpush3.bf16.msra.mxu1 %v2835_v26  ;;  %v852_v26 = vld [vmem:[%s2987_s6] sm:$0x1]  ;;  %s2612_s6 = smov [#allocation11]  }
 0x54a   :  { %2428 = vmatprep.subr.bf16.mxu1 %v2609_v44 }
 0x54d   :  { %2430 = vmatpush3.bf16.msra.mxu1 %v2839_v29  ;;  %v853_v29 = vld [vmem:[%s2988_s7] sm:$0x1]  ;;  %s1545_s7 = sshll.u32 %s2612_s6, 4  ;;  %s1546_s7 = int_to_ptr.vmem [resolvable:$true] %s1545_s7 }
 0x54e   :  { %s2572_s13 = scalar_lea.vmem %s1546_s7, 512  ;;  %p2577_p13 = scmp.lt.s32.totalorder %s1546_s7, %s1546_s7 }
 0x54f   :  { %p2573_p12 = scmp.ne.s32.totalorder %s1546_s7, %s2572_s13  ;;  %p2578_p0 = scmp.lt.s32.totalorder %s2572_s13, %s2572_s13 }
 0x550   :  { %2157 = vmatmul.mubr.f32.vlgmr.msra.gmra.mrb[14].mxu1 %v1354_v10 }
 0x551   :  { %p2579_p1 = por %p2578_p0, %p2577_p13 }
 0x553   :  { %p2580_p2 = pnand %p2579_p1, %p2573_p12 }
 0x603   :  { %v1421_v30 = vpop.f32.mrb[12].mxu1 }
 0x604   :  { %v2123_v32 = vpop.f32.mrb[13].mxu1  ;;  %v1425_v18 = vmul.f32 0.001953125, %v1421_v30 }
 0x606   :  { %v1497_v36 = vmul.f32 %v1425_v18, %v1425_v18 }
 0x623   :  { %v1492_v39 = vpop.f32.mrb[14].mxu1 }
 0x624   :  { %v1496_v54 = vmul.f32 0.001953125, %v1492_v39  ;;  %v2158_v55 = vpop.f32.mrb[15].mxu1 }
 0x626   :  { %v1498_v23 = vsub.f32 %v1496_v54, %v1497_v36 }
 0x628   :  { %v1499_v56 = vadd.f32 1e-05, %v1498_v23 }
 0x62a   :  { %2460 = vrsqrt.f32 %v1499_v56 }
 0x634   :  { %v2461_v44 = vpop.eup %2460 }
 0x635   :  { %v1501_v57 = vmul.f32 %v2461_v44, %v852_v26 }
 0x637   :  { %v1502_v58 = vmul.f32 %v1501_v57, %v1425_v18  ;;  %v1508_v59 = vrot.slane %v1501_v57, %v2904_v22 }
 0x639   :  { %v1503_v60 = vsub.f32 %v853_v29, %v1502_v58  ;;  %v1510_v61 = vmul.f32 %v1508_v59, %v1310_v25  ;;  %v1511_v62 = vmul.f32 %v2085_v19, %v1508_v59  ;;  %v1512_v13 = vmul.f32 %v1508_v59, %v1320_v35 }
 0x63a   :  { %v1513_v15 = vmul.f32 %v2088_v33, %v1508_v59 }
 0x63b   :  { %v1518_v63 = vrot.slane %v1503_v60, %v2904_v22 }
 0x63d   :  { %v1520_v7 = vadd.f32 %v1518_v63, %v1510_v61  ;;  %v1521_v20 = vadd.f32 %v1518_v63, %v1511_v62  ;;  %v1522_v0 = vadd.f32 %v1518_v63, %v1512_v13  ;;  %v1523_v14 = vadd.f32 %v1518_v63, %v1513_v15 }
 0x63f   :  { %vm1524_vm7 = vcmp.gt.f32.partialorder %v1520_v7, 0.0  ;;  %vm1525_vm8 = vcmp.gt.f32.partialorder %v1521_v20, 0.0  ;;  %vm1526_vm9 = vcmp.gt.f32.partialorder %v1522_v0, 0.0  ;;  %vm1527_vm10 = vcmp.gt.f32.partialorder %v1523_v14, 0.0 }
 0x640   :  { %v1528_v1 = vmul.f32 0.01, %v1520_v7  ;;  %v1529_v2 = vmul.f32 0.01, %v1521_v20  ;;  %v1530_v16 = vmul.f32 0.01, %v1522_v0 }
 0x641   :  { %v1531_v4 = vmul.f32 0.01, %v1523_v14 }
 0x642   :  { %v1532_v6 = vsel %vm1524_vm7, %v1520_v7, %v1528_v1  ;;  %v1533_v8 = vsel %vm1525_vm8, %v1521_v20, %v1529_v2  ;;  %v1534_v21 = vsel %vm1526_vm9, %v1522_v0, %v1530_v16 }
 0x643   :  { %v1535_v9 = vsel %vm1527_vm10, %v1523_v14, %v1531_v4  ;;  %1536 = vst [vmem:[#allocation11] sm:$0xff] %v1532_v6  ;;  %1537 = vst [vmem:[#allocation11 + $0x8] sm:$0xff] %v1533_v8 }
 0x644   :  { %1538 = vst [vmem:[#allocation11 + $0x10] sm:$0xff] %v1534_v21  ;;  %1539 = vst [vmem:[#allocation11 + $0x18] sm:$0xff] %v1535_v9 }
 0x645   :  { %2583 = shalt.err (!%p2580_p2)
}
 0x646   :  { %s2584_s14 = scalar_lea.hbm %s2990_s9, 512 }
 0x647   :  { %p2585_p3 = scmp.ne.s32.totalorder %s2990_s9, %s2584_s14  ;;  %p2588_p4 = scmp.lt.u32.totalorder %s2584_s14, %s2990_s9 }
 0x649   :  { %p2590_p5 = pnand %p2588_p4, %p2585_p3 }
 0x64b   :  { %2593 = shalt.err (!%p2590_p5)
}
 0x64c   :  { %1551 = dma.vmem_to_hbm [thread:$0]  %s1546_s7, 512, %s2990_s9, [#allocation4], %s2604_s21, %s2604_s21, %s2605_s22  }
 0x64d   :  { %2600 = dma.done.wait [#allocation4], 512  }
 0x64e   :  { %2601 = vsyncadd [#allocation4], 4294966784 }
 0x64f   :  { %1555 = vsyncpa [#allocation3], 1 }
 0x650   :  { %1556 = vsyncpa [#allocation6], 1 }
 0x651   :  { %1557 = vsyncpa [#allocation9], 1 }
 0x652   :  { %1558 = vsyncpa [#allocation4], 1 }

</bundles_post_ra>
